<compile_context>
chip_gen: v5e
topology: v5e:2x2
jax: 0.10.0
libtpu: 0.0.40
codegen_flags: <defaults>
</compile_context>

<pallas_src>
import jax
import jax.numpy as jnp
from jax.experimental import pallas as pl
from jax.experimental.pallas import tpu as pltpu


# ----------------------------------------------------------------------------
# Faithful re-implementation of the reference module's semantics.
# ----------------------------------------------------------------------------
class Encoders:
    """Port of the reference nn.Module: no parameters, forward() -> None.

    Per the performance review, the forward path contains no pallas_call:
    the reference has zero compute, so the fastest kernel is no kernel.
    """

    def __init__(self):
        # Reference __init__ is `pass`: no parameters to initialize.
        pass

    def forward(self):
        # TODO(synk): reference forward() body is `pass` — it takes no inputs,
        # performs no compute, and returns None.  Nothing to lower to Pallas.
        return None

    __call__ = forward


# ----------------------------------------------------------------------------
# Standalone Pallas demonstrator (identity copy) — NOT part of forward().
# ----------------------------------------------------------------------------
def _identity_kernel(x_ref, o_ref):
    o_ref[...] = x_ref[...]


_GRIDLESS_CUTOFF_BYTES = 256 * 1024       # below this, skip the grid entirely
_TILE_TARGET_BYTES = 8 * 1024 * 1024      # per-tile budget (amortizes ~0.35 µs/step)
_VMEM_HEADROOM_BYTES = 8 * 1024 * 1024    # slack left for the compiler


def _vmem_capacity_bytes() -> int:
    """Generation-aware VMEM capacity; conservative fallback = 64 MiB (v7x)."""
    try:
        return int(pltpu.get_tpu_info().vmem_capacity_bytes)
    except Exception:
        return 64 * 1024 * 1024


def _sublane_multiple(dtype) -> int:
    """Packed-sublane multiple: 8 for 4-byte, 16 for 2-byte, 32 for 1-byte."""
    itemsize = jnp.dtype(dtype).itemsize
    return max(8, 32 // max(1, itemsize))


def pallas_identity(x: jax.Array, tile_rows: int | None = None,
                    donate: bool = False) -> jax.Array:
    """Identity through a Pallas TPU kernel.

    `donate=True` aliases the output HBM buffer onto the input
    (input_output_aliases={0: 0}); callers must then not reuse `x`.
    """
    orig_shape = x.shape
    if x.ndim == 1:
        x2 = x.reshape(1, -1)
    elif x.ndim == 2:
        x2 = x
    else:
        # Flatten leading dims into a lane-dense 2-D slab (last dim stays last).
        x2 = x.reshape(-1, orig_shape[-1])

    rows, cols = x2.shape
    itemsize = jnp.dtype(x2.dtype).itemsize
    nbytes = rows * cols * itemsize
    alias = {0: 0} if donate else {}

    if tile_rows is None and nbytes <= _GRIDLESS_CUTOFF_BYTES:
        # Gridless single-tile path for tiny arrays only (no pipeline overlap,
        # but also no per-step pipeline scaffolding).
        y = pl.pallas_call(
            _identity_kernel,
            out_shape=jax.ShapeDtypeStruct((rows, cols), x2.dtype),
            input_output_aliases=alias,
        )(x2)
        return y.reshape(orig_shape)

    # Tiled, pipelined path: tile rows, keep full lane-dense columns.
    sub = _sublane_multiple(x2.dtype)
    vmem_cap = _vmem_capacity_bytes()
    # 4 live tiles (in + out, each double-buffered) plus headroom must fit VMEM.
    tile_budget = min(_TILE_TARGET_BYTES,
                      max(sub * cols * itemsize,
                          (vmem_cap - _VMEM_HEADROOM_BYTES) // 4))
    if tile_rows is None:
        bytes_per_row = cols * itemsize
        tile_rows = max(sub, (tile_budget // bytes_per_row) // sub * sub)
    tile_rows = min(tile_rows, rows)

    tile_bytes = tile_rows * cols * itemsize
    vmem_limit = int(min(vmem_cap, 4 * tile_bytes + _VMEM_HEADROOM_BYTES))

    grid = (pl.cdiv(rows, tile_rows),)

    # TODO(synk): on v7x (2 TensorCores/chip) a leading core axis with
    # pltpu.CORE_PARALLEL would shard the copy across both cores; kept plain
    # "parallel" here so the identical build runs cleanly on v5e/v6e as well.
    y = pl.pallas_call(
        _identity_kernel,
        out_shape=jax.ShapeDtypeStruct((rows, cols), x2.dtype),
        grid_spec=pl.GridSpec(
            grid=grid,
            in_specs=[pl.BlockSpec((tile_rows, cols), lambda i: (i, 0))],
            out_specs=pl.BlockSpec((tile_rows, cols), lambda i: (i, 0)),
        ),
        input_output_aliases=alias,
        compiler_params=pltpu.CompilerParams(
            dimension_semantics=("parallel",),
            vmem_limit_bytes=vmem_limit,
        ),
    )(x2)
    return y.reshape(orig_shape)


if __name__ == "__main__":
    key = jax.random.PRNGKey(0)
    k1, k2 = jax.random.split(key)

    # The module itself: forward is a no-op, exactly like the reference.
    enc = Encoders()
    out = enc.forward()
    assert out is None

    # Pallas demonstrator, separate from the module's (empty) forward.
    # 1) Gridless single-tile path for tiny arrays (16 KiB).
    x_small = jax.random.normal(k1, (32, 128), dtype=jnp.float32)
    y_small = pallas_identity(x_small)
    jax.block_until_ready(y_small)
    assert jnp.array_equal(y_small, x_small), "gridless identity mismatch"

    # 2) Tiled, pipelined path (explicit tile_rows so grid > 1 at small size).
    x_big = jax.random.normal(k2, (512, 256), dtype=jnp.float32)
    y_big = pallas_identity(x_big, tile_rows=128)
    jax.block_until_ready(y_big)
    assert jnp.array_equal(y_big, x_big), "tiled identity mismatch"

    print("KERNEL_OK")
</pallas_src>

<mosaic_0001>
module attributes {stable_mosaic.version = 11 : i64} {
  func.func @_identity_kernel(%arg0: memref<32x128xf32, #tpu.memory_space<vmem>>, %arg1: memref<32x128xf32, #tpu.memory_space<vmem>>) attributes {dimension_semantics = [], scalar_prefetch = 0 : i64, scratch_operands = 0 : i64, tpu.core_type = #tpu.core_type<tc>} {
    %c0 = arith.constant 0 : index
    %c0_0 = arith.constant 0 : index
    %0 = vector.load %arg0[%c0, %c0_0] : memref<32x128xf32, #tpu.memory_space<vmem>>, vector<32x128xf32>
    %c0_1 = arith.constant 0 : index
    %c0_2 = arith.constant 0 : index
    %1 = vector.load %arg1[%c0_1, %c0_2] : memref<32x128xf32, #tpu.memory_space<vmem>>, vector<32x128xf32>
    tpu.vector_store %arg1[%c0_1, %c0_2], %0 {strides = array<i32>} : memref<32x128xf32, #tpu.memory_space<vmem>>, vector<32x128xf32>,
    return
  }
}

</mosaic_0001>

<bundles_post_ra>
// kernel: tpu_custom_call.1
= control target key start
LH: loop header
LB: loop body
LE: loop exit
PB: predicated region body
PF: predicated region fallthrough
CT: control target
= control target key end

     0   :  { %6 = vsyncpa [#allocation3], 0  ;;  %s128_s0 = inlined_call_operand.hbm [shape: f32[32,128], index: 0, kind: input, shape index: {}]   ;;  %s129_s1 = inlined_call_operand.hbm [shape: f32[32,128], index: 1, kind: output, shape index: {}]  }
   0x1   :  { %7 = vsyncpa [#allocation4], 0  ;;  %s12_s8 = sshll.u32 %s128_s0, 4  ;;  %s108_s9 = smov [#allocation2]   ;;  %s13_s8 = int_to_ptr.hbm [resolvable:$true] %s12_s8 }
   0x2   :  { %s14_s10 = sshll.u32 %s108_s9, 4  ;;  %s109_s11 = smov 128   ;;  %s15_s10 = int_to_ptr.vmem [resolvable:$true] %s14_s10 }
   0x3   :  { %s110_s12 = smov 8  }
   0x4   :  { %20 = dma.hbm_to_vmem [thread:$0]  %s13_s8, 512, %s15_s10, [#allocation3], %s109_s11, %s109_s11, %s110_s12  }
   0x5   :  { %104 = dma.done.wait [#allocation3], 512  }
   0x6   :  { %105 = vsyncadd [#allocation3], 4294966784  ;;  %s111_s13 = smov [#allocation5]   ;;  %s39_s17 = sshll.u32 %s129_s1, 4  ;;  %v25_v0 = vld [vmem:[#allocation2] sm:$0xff]  ;;  %v26_v1 = vld [vmem:[#allocation2 + $0x8] sm:$0xff]  ;;  %s40_s17 = int_to_ptr.hbm [resolvable:$true] %s39_s17 }
   0x7   :  { %s37_s14 = sshll.u32 %s111_s13, 4  ;;  %v27_v2 = vld [vmem:[#allocation2 + $0x10] sm:$0xff]  ;;  %29 = vst [vmem:[#allocation5] sm:$0xff] %v25_v0  ;;  %v28_v3 = vld [vmem:[#allocation2 + $0x18] sm:$0xff]  ;;  %s38_s14 = int_to_ptr.vmem [resolvable:$true] %s37_s14 }
   0x8   :  { %30 = vst [vmem:[#allocation5 + $0x8] sm:$0xff] %v26_v1 }
   0x9   :  { %31 = vst [vmem:[#allocation5 + $0x10] sm:$0xff] %v27_v2 }
   0xa   :  { %32 = vst [vmem:[#allocation5 + $0x18] sm:$0xff] %v28_v3 }
   0xb   :  { %45 = dma.vmem_to_hbm [thread:$0]  %s38_s14, 512, %s40_s17, [#allocation4], %s109_s11, %s109_s11, %s110_s12  }
   0xc   :  { %106 = dma.done.wait [#allocation4], 512  }
   0xd   :  { %107 = vsyncadd [#allocation4], 4294966784 }
   0xe   :  { %50 = vsyncpa [#allocation3], 1 }
   0xf   :  { %51 = vsyncpa [#allocation4], 1 }

</bundles_post_ra>
